<compile_context>
chip_gen: v6e
topology: v6e:2x2x1
jax: 0.10.0
libtpu: 0.0.40
codegen_flags: <defaults>
</compile_context>

<pallas_src>
import functools

import numpy as np
import jax
import jax.numpy as jnp
from jax.experimental import pallas as pl
from jax.experimental.pallas import tpu as pltpu


# ----------------------------------------------------------------------------------
# In-kernel helpers
# ----------------------------------------------------------------------------------
def _ln(x, g, b, eps=1e-5):
    mu = jnp.mean(x, axis=-1, keepdims=True)
    var = jnp.mean((x - mu) ** 2, axis=-1, keepdims=True)
    return (x - mu) * jax.lax.rsqrt(var + eps) * g + b


def _gelu(x):
    # PyTorch nn.GELU default (erf form).  The tanh form would move the transcendental to
    # the otherwise-idle EUP slot, but drifts from the reference numerics, so keep erf.
    return jax.nn.gelu(x, approximate=False)


# ----------------------------------------------------------------------------------
# Kernel A: mask_enc conv-as-matmul (MXU) + residual add + norm1, TB rows per grid step
# ----------------------------------------------------------------------------------
def _maskenc_add_ln_kernel(rp_ref, w_ref, b_ref, fea_ref, g_ref, bb_ref, o_ref):
    # rp_ref: (TB, 9, N) resized mask taps (taps in sublanes, tokens in lanes)
    # w_ref:  (9, C) conv weights, b_ref: (1, C) conv bias
    # fea_ref/o_ref: (TB, N, C), g/bb: norm1 gamma/beta
    tb = fea_ref.shape[0]
    for t in range(tb):                       # trace-time unrolled; TB capped small
        # conv-as-matmul on the MXU: contract the 9 taps -> (N, C)
        mask_c = jax.lax.dot_general(
            rp_ref[t], w_ref[...],
            dimension_numbers=(((0,), (0,)), ((), ())),
            preferred_element_type=jnp.float32)
        acc = fea_ref[t] + mask_c + b_ref[...]
        o_ref[t] = _ln(acc, g_ref[...], bb_ref[...])


def _pick_tb(bt, n, c, target_bytes=512 * 1024, max_tb=8):
    """Largest divisor of BT (capped) so each Kernel-A block is reasonably large."""
    per_row = (2 * n * c + 16 * n) * 4        # fea in + out + rp (9 -> 16 sublanes), f32
    tb = int(max(1, min(bt, max_tb, -(-target_bytes // per_row))))
    while bt % tb:
        tb -= 1
    return tb


def maskenc_add_layernorm(rp, w9c, bias, fea, g, b):
    BT, N, C = fea.shape
    TB = _pick_tb(BT, N, C)
    return pl.pallas_call(
        _maskenc_add_ln_kernel,
        out_shape=jax.ShapeDtypeStruct((BT, N, C), jnp.float32),
        grid=(BT // TB,),
        in_specs=[
            pl.BlockSpec((TB, 9, N), lambda i: (i, 0, 0)),
            pl.BlockSpec((9, C), lambda i: (0, 0)),
            pl.BlockSpec((1, C), lambda i: (0, 0)),
            pl.BlockSpec((TB, N, C), lambda i: (i, 0, 0)),
            pl.BlockSpec((1, C), lambda i: (0, 0)),
            pl.BlockSpec((1, C), lambda i: (0, 0)),
        ],
        out_specs=pl.BlockSpec((TB, N, C), lambda i: (i, 0, 0)),
        compiler_params=pltpu.CompilerParams(dimension_semantics=("parallel",)),
    )(rp, w9c, bias, fea, g, b)


# ----------------------------------------------------------------------------------
# Kernel B: full memory-update time loop (grid=(B, T_upd), state in VMEM scratch)
# ----------------------------------------------------------------------------------
def _memory_update_kernel(
    fea_ref, mem0_ref,
    cw1f, cw1a, cb1, cw2, cb2, clng, clnb,     # c_func: Mlp(2C->4C->C)+LN (cw1 split fea/ap)
    qw, qb, kw, kb,                            # o_func (ProjectDotDistance) q/k projections
    mw1, mb1, mw2, mb2,                        # m_func: Mlp(C->4C->C)
    pw1, pb1, pw2, pb2,                        # post_func: Mlp(C->4C->C)
    n2g, n2b,                                  # norm2
    out_ref,
    mem_sc, cmix_sc, omix_sc,                  # VMEM: carried state + head-merge slabs
    *, num_heads,
):
    t = pl.program_id(1)
    f32 = jnp.float32
    bf16 = jnp.bfloat16

    @pl.when(t == 0)
    def _():
        mem_sc[...] = mem0_ref[0]

    fea = fea_ref[0, 0]                        # (N, C) f32
    mem = mem_sc[...]                          # (M, C) f32 carried state
    N, C = fea.shape
    M = mem.shape[0]
    H = num_heads
    hd = C // H
    scale = 1.0 / float(np.sqrt(hd))

    fea_b = fea.astype(bf16)
    mem_b = mem.astype(bf16)

    # ---- c_global = LayerNorm(Mlp(concat(fea, mean(mem)))); concat folded into 2 matmuls
    ap = jnp.mean(mem, axis=0, keepdims=True).astype(bf16)                     # (1, C)
    h1 = jnp.dot(fea_b, cw1f[...], preferred_element_type=f32)
    h1 = h1 + jnp.dot(ap, cw1a[...], preferred_element_type=f32) + cb1[...]
    h1 = _gelu(h1)
    cg = jnp.dot(h1.astype(bf16), cw2[...], preferred_element_type=f32) + cb2[...]
    cg = _ln(cg, clng[...], clnb[...])                                         # (N, C) f32
    cg_b = cg.astype(bf16)

    # ---- m_func(mem)
    hm = _gelu(jnp.dot(mem_b, mw1[...], preferred_element_type=f32) + mb1[...])
    m_out = jnp.dot(hm.astype(bf16), mw2[...],
                    preferred_element_type=f32) + mb2[...]                     # (M, C)

    # ---- o_func projections: full C-wide matmuls (full MXU width); heads are taken as
    #      hd-wide static lane slices below (no broadcast copies, no selection matmuls).
    q = jnp.dot(cg_b, qw[...], preferred_element_type=f32) + qb[...]           # (N, C)
    k = jnp.dot(mem_b, kw[...], preferred_element_type=f32) + kb[...]          # (M, C)
    q_b = q.astype(bf16)
    k_b = k.astype(bf16)

    for h in range(H):                                    # trace-time unrolled (H small)
        sl = slice(h * hd, (h + 1) * hd)
        # logits^T: s[m, n] = scale * <k[m, head h], q[n, head h]>
        s = jax.lax.dot_general(k_b[:, sl], q_b[:, sl],
                                dimension_numbers=(((1,), (1,)), ((), ())),
                                preferred_element_type=f32) * scale            # (M, N)
        og = jax.nn.sigmoid(s)                                                 # o_global[h]^T
        # _c head h = o_global[h]^T @ c_global[:, head h]  -> merged slab (M, C)
        cmix_sc[:, sl] = jnp.dot(og.astype(bf16), cg_b[:, sl],
                                 preferred_element_type=f32)                   # (M, hd)
        # _o head h = m_func(mem)[:, head h] * (1 - mean_n o_global[h, :, m])
        gate = jnp.mean(og, axis=1, keepdims=True)                             # (M, 1)
        omix_sc[:, sl] = m_out[:, sl] * (1.0 - gate)

    # ---- post_func on the head-merged _c: single full-K (K=C) matmuls, no (H,M,4C) temp
    hp = _gelu(jnp.dot(cmix_sc[...].astype(bf16), pw1[...],
                       preferred_element_type=f32) + pb1[...])
    c_post = jnp.dot(hp.astype(bf16), pw2[...], preferred_element_type=f32) + pb2[...]

    new_mem = _ln(c_post + omix_sc[...], n2g[...], n2b[...])
    mem_sc[...] = new_mem

    # NOTE: at production C (multiple of 128, default 768) this store is already lane-dense.
    @pl.when(t == pl.num_programs(1) - 1)
    def _():
        out_ref[0] = new_mem


_UPDATE_PARAM_ORDER = [
    "cw1f", "cw1a", "cb1", "cw2", "cb2", "clng", "clnb",
    "qw", "qb", "kw", "kb",
    "mw1", "mb1", "mw2", "mb2",
    "pw1", "pb1", "pw2", "pb2",
    "n2g", "n2b",
]


def memory_update_scan(prep, fea_u, prev_m, num_heads):
    """fea_u: (B, Tu, N, C) timesteps to absorb, prev_m: (B, M, C) -> new mem (B, M, C)."""
    B, Tu, N, C = fea_u.shape
    M = prev_m.shape[1]
    w_list = [prep[k] for k in _UPDATE_PARAM_ORDER]

    def wspec(a):
        nd = a.ndim
        # Constant-index BlockSpec => weight stays VMEM-resident across the whole grid.
        # TODO(synk): at production C (>=512) additionally single-buffer these constant
        #             weights (pipeline_mode) to halve the resident footprint on v7x/v5e.
        return pl.BlockSpec(a.shape, lambda b, t, _n=nd: (0,) * _n)

    in_specs = [
        pl.BlockSpec((1, 1, N, C), lambda b, t: (b, t, 0, 0)),
        pl.BlockSpec((1, M, C), lambda b, t: (b, 0, 0)),
    ] + [wspec(a) for a in w_list]

    # Explicit VMEM budget: double-buffered resident weights + activation blocks +
    # carried-state / head-merge scratch, with headroom; capped at v7x's physical 64 MiB.
    wbytes = sum(int(np.prod(a.shape)) * a.dtype.itemsize for a in w_list)
    act_bytes = (N * C + 2 * M * C) * 4
    scratch_bytes = 3 * M * C * 4
    vmem_limit = int(min(64 << 20,
                         max(32 << 20,
                             2 * (wbytes + act_bytes) + scratch_bytes + (8 << 20))))

    # NOTE(v7x): keep B >= 2 per chip if possible — only the B axis is "parallel" and T is
    # a serial dependency, so B=1 idles one of the two TensorCores.
    return pl.pallas_call(
        functools.partial(_memory_update_kernel, num_heads=num_heads),
        out_shape=jax.ShapeDtypeStruct((B, M, C), jnp.float32),
        grid=(B, Tu),
        in_specs=in_specs,
        out_specs=pl.BlockSpec((1, M, C), lambda b, t: (b, 0, 0)),
        scratch_shapes=[pltpu.VMEM((M, C), jnp.float32),   # carried memory state
                        pltpu.VMEM((M, C), jnp.float32),   # head-merged _c
                        pltpu.VMEM((M, C), jnp.float32)],  # head-merged _o
        input_output_aliases={1: 0},                       # reuse prev_m buffer for output
        compiler_params=pltpu.CompilerParams(
            dimension_semantics=("parallel", "arbitrary"),
            vmem_limit_bytes=vmem_limit),
    )(fea_u, prev_m, *w_list)


# ----------------------------------------------------------------------------------
# Glue: bilinear interpolation matrices (PyTorch align_corners=False, no antialias)
# ----------------------------------------------------------------------------------
def bilinear_matrix(out_size, in_size):
    i = np.arange(out_size)
    src = (i + 0.5) * (in_size / out_size) - 0.5
    i0 = np.floor(src).astype(np.int64)
    frac = (src - i0).astype(np.float32)
    i0c = np.clip(i0, 0, in_size - 1)
    i1c = np.clip(i0 + 1, 0, in_size - 1)
    W = np.zeros((out_size, in_size), np.float32)
    W[np.arange(out_size), i0c] += (1.0 - frac)
    W[np.arange(out_size), i1c] += frac
    return jnp.asarray(W)


# ----------------------------------------------------------------------------------
# Full forward (mirrors LocalMemoryNet.forward)
# ----------------------------------------------------------------------------------
def local_memory_net_forward(prep, cur_fea, cur_mask, prev_m=None, *, mem_size, num_heads):
    B, T, N, C = cur_fea.shape
    BT = B * T
    side = int(np.sqrt(N))
    Hm, Wm = cur_mask.shape[-2], cur_mask.shape[-1]

    # mask_enc path: conv and bilinear resize are linear in the 1-channel mask, so resize
    # the 9 shifted taps first (tiny (BT, 9, N) tensor, taps in the sublane dim), then
    # expand to C with a single MXU matmul inside kernel A.  The full-resolution
    # (BT, Hm, Wm, C) conv activation never exists in HBM.
    mask_bt = cur_mask.reshape(BT, Hm, Wm).astype(jnp.float32)
    padded = jnp.pad(mask_bt, ((0, 0), (1, 1), (1, 1)))
    taps = jnp.stack([padded[:, kh:kh + Hm, kw:kw + Wm]
                      for kh in range(3) for kw in range(3)], axis=1)   # (BT, 9, Hm, Wm)
    Wr = bilinear_matrix(side, Hm)
    Wc = bilinear_matrix(side, Wm)
    rp = jnp.einsum("iy,ptyx,jx->ptij", Wr, taps, Wc)                   # (BT, 9, side, side)
    rp = rp.reshape(BT, 9, N)

    # cur_fea = norm1(cur_fea + mask_enc)   (fused conv-matmul + add + LayerNorm kernel)
    fea = maskenc_add_layernorm(
        rp, prep["conv_w9c"], prep["conv_b"],
        cur_fea.reshape(BT, N, C).astype(jnp.float32),
        prep["n1_g"], prep["n1_b"],
    ).reshape(B, T, N, C)

    n_new = T * N
    if prev_m is None:
        if n_new <= mem_size:
            return fea.reshape(B, -1, C)
        init_t = int(mem_size // float(N))
        if init_t > 0:
            prev_m = fea[:, :init_t].reshape(B, -1, C)
        else:
            prev_m = fea[:, 0].mean(axis=1).reshape(B, 1, C)
    elif prev_m.shape[1] == mem_size:
        init_t = 0
    elif n_new + prev_m.shape[1] <= mem_size:
        return jnp.concatenate([prev_m, fea.reshape(B, -1, C)], axis=1)
    else:
        init_t = int((mem_size - prev_m.shape[1]) // float(N))
        if init_t > 0:
            prev_m = jnp.concatenate([prev_m, fea[:, :init_t].reshape(B, -1, C)], axis=1)

    # _check_memory
    if prev_m.shape[1] < mem_size:
        r = mem_size - prev_m.shape[1]
        pad_mem = jnp.tile(prev_m.mean(axis=1, keepdims=True), (1, r, 1))
        prev_m = jnp.concatenate([prev_m, pad_mem], axis=1)

    if init_t >= T:
        return prev_m

    # Whole time loop in one pallas_call (weights stay VMEM-resident; memory state in
    # VMEM scratch; B parallel across TensorCores, T sequential/"arbitrary").
    return memory_update_scan(prep, fea[:, init_t:], prev_m, num_heads)


# ----------------------------------------------------------------------------------
# Parameters: deterministic init + ONE-TIME restructuring (hoisted out of the forward)
# ----------------------------------------------------------------------------------
def init_params(key, C, mlp_ratio=4):
    H = C * mlp_ratio

    def tn(k, shape):
        return 0.02 * jax.random.truncated_normal(k, -2.0, 2.0, shape, jnp.float32)

    ks = jax.random.split(key, 11)
    conv_w = tn(ks[0], (C, 1, 3, 3))           # Conv2d(1, C, 3, 3)
    params = {
        "conv_w9c": conv_w.reshape(C, 9).T,    # (9, C)
        "conv_b": tn(ks[1], (1, C)),
        "n1_g": jnp.ones((1, C), jnp.float32),
        "n1_b": jnp.zeros((1, C), jnp.float32),
        # c_func: Mlp(2C -> 4C -> C) + LayerNorm
        "cw1": tn(ks[2], (2 * C, H)), "cb1": jnp.zeros((1, H), jnp.float32),
        "cw2": tn(ks[3], (H, C)),     "cb2": jnp.zeros((1, C), jnp.float32),
        "clng": jnp.ones((1, C), jnp.float32), "clnb": jnp.zeros((1, C), jnp.float32),
        # o_func: ProjectDotDistance q/k projections
        "qw": tn(ks[4], (C, C)), "qb": jnp.zeros((1, C), jnp.float32),
        "kw": tn(ks[5], (C, C)), "kb": jnp.zeros((1, C), jnp.float32),
        # m_func
        "mw1": tn(ks[6], (C, H)), "mb1": jnp.zeros((1, H), jnp.float32),
        "mw2": tn(ks[7], (H, C)), "mb2": jnp.zeros((1, C), jnp.float32),
        # post_func
        "pw1": tn(ks[8], (C, H)), "pb1": jnp.zeros((1, H), jnp.float32),
        "pw2": tn(ks[9], (H, C)), "pb2": jnp.zeros((1, C), jnp.float32),
        # norm2
        "n2g": jnp.ones((1, C), jnp.float32), "n2b": jnp.zeros((1, C), jnp.float32),
    }
    return params


def prepare_params(params, num_heads):
    """One-time weight restructuring (cw1 split, bf16 matmul operands); keep LN/bias f32."""
    bf16 = jnp.bfloat16
    C = params["qw"].shape[0]
    assert C % num_heads == 0, "embed_dim must be divisible by num_heads"
    return {
        # mask_enc + norm1 (kernel A) — memory-bound, keep f32
        "conv_w9c": params["conv_w9c"], "conv_b": params["conv_b"],
        "n1_g": params["n1_g"], "n1_b": params["n1_b"],
        # memory-update (kernel B) — matmul weights in bf16, f32 accumulation in-kernel
        "cw1f": params["cw1"][:C].astype(bf16), "cw1a": params["cw1"][C:].astype(bf16),
        "cb1": params["cb1"],
        "cw2": params["cw2"].astype(bf16), "cb2": params["cb2"],
        "clng": params["clng"], "clnb": params["clnb"],
        "qw": params["qw"].astype(bf16), "qb": params["qb"],
        "kw": params["kw"].astype(bf16), "kb": params["kb"],
        "mw1": params["mw1"].astype(bf16), "mb1": params["mb1"],
        "mw2": params["mw2"].astype(bf16), "mb2": params["mb2"],
        "pw1": params["pw1"].astype(bf16), "pb1": params["pb1"],
        "pw2": params["pw2"].astype(bf16), "pb2": params["pb2"],
        "n2g": params["n2g"], "n2b": params["n2b"],
    }


if __name__ == "__main__":
    B, T, N, C = 2, 2, 16, 32          # N = 16 -> sqrt(N) = 4
    H_MASK = W_MASK = 16
    MEM_SIZE = 16
    NUM_HEADS = 8

    key = jax.random.PRNGKey(0)
    kf, km, kp = jax.random.split(key, 3)
    cur_fea = jax.random.normal(kf, (B, T, N, C), jnp.float32)
    cur_mask = (jax.random.uniform(km, (B, T, H_MASK, W_MASK)) > 0.5).astype(jnp.float32)
    params = init_params(kp, C)
    prep = prepare_params(params, NUM_HEADS)   # hoisted: done once at load time

    out = local_memory_net_forward(
        prep, cur_fea, cur_mask, prev_m=None, mem_size=MEM_SIZE, num_heads=NUM_HEADS
    )
    out = jax.block_until_ready(out)

    assert out.shape == (B, MEM_SIZE, C), out.shape
    assert bool(jnp.all(jnp.isfinite(out)))
    print("KERNEL_OK")
</pallas_src>

<mosaic_0001>
module attributes {stable_mosaic.version = 11 : i64} {
  func.func @_maskenc_add_ln_kernel(%arg0: i32, %arg1: memref<4x9x16xf32, #tpu.memory_space<vmem>>, %arg2: memref<9x32xf32, #tpu.memory_space<vmem>>, %arg3: memref<1x32xf32, #tpu.memory_space<vmem>>, %arg4: memref<4x16x32xf32, #tpu.memory_space<vmem>>, %arg5: memref<1x32xf32, #tpu.memory_space<vmem>>, %arg6: memref<1x32xf32, #tpu.memory_space<vmem>>, %arg7: memref<4x16x32xf32, #tpu.memory_space<vmem>>) attributes {dimension_semantics = [#tpu.dimension_semantics<parallel>], iteration_bounds = array<i64: 1>, scalar_prefetch = 0 : i64, scratch_operands = 0 : i64, tpu.core_type = #tpu.core_type<tc>, window_params = [{transform_indices = @transform_0, window_bounds = array<i64: 4, 9, 16>}, {pipeline_mode = #tpu.pipeline_mode<synchronous>, transform_indices = @transform_1, window_bounds = array<i64: 9, 32>}, {pipeline_mode = #tpu.pipeline_mode<synchronous>, transform_indices = @transform_2, window_bounds = array<i64: 1, 32>}, {transform_indices = @transform_3, window_bounds = array<i64: 4, 16, 32>}, {pipeline_mode = #tpu.pipeline_mode<synchronous>, transform_indices = @transform_4, window_bounds = array<i64: 1, 32>}, {pipeline_mode = #tpu.pipeline_mode<synchronous>, transform_indices = @transform_5, window_bounds = array<i64: 1, 32>}, {transform_indices = @transform_6, window_bounds = array<i64: 4, 16, 32>}]} {
    %c0 = arith.constant 0 : index
    %c0_0 = arith.constant 0 : index
    %c0_1 = arith.constant 0 : index
    %0 = vector.load %arg1[%c0, %c0_0, %c0_1] : memref<4x9x16xf32, #tpu.memory_space<vmem>>, vector<1x9x16xf32>
    %1 = vector.shape_cast %0 : vector<1x9x16xf32> to vector<9x16xf32>
    %c0_2 = arith.constant 0 : index
    %c0_3 = arith.constant 0 : index
    %2 = vector.load %arg2[%c0_2, %c0_3] : memref<9x32xf32, #tpu.memory_space<vmem>>, vector<9x32xf32>
    %cst = arith.constant dense<0.000000e+00> : vector<16x32xf32>
    %3 = tpu.matmul %1, %2, %cst {dimension_numbers = #tpu.dot_dimension_numbers<[0], [0], [1], [1], [0, 1, 1, 1], [], []>} : vector<9x16xf32>, vector<9x32xf32>, vector<16x32xf32> -> vector<16x32xf32>
    %c0_4 = arith.constant 0 : index
    %c0_5 = arith.constant 0 : index
    %c0_6 = arith.constant 0 : index
    %4 = vector.load %arg4[%c0_4, %c0_5, %c0_6] : memref<4x16x32xf32, #tpu.memory_space<vmem>>, vector<1x16x32xf32>
    %5 = vector.shape_cast %4 : vector<1x16x32xf32> to vector<16x32xf32>
    %6 = arith.addf %5, %3 : vector<16x32xf32>
    %c0_7 = arith.constant 0 : index
    %c0_8 = arith.constant 0 : index
    %7 = vector.load %arg3[%c0_7, %c0_8] : memref<1x32xf32, #tpu.memory_space<vmem>>, vector<1x32xf32>
    %8 = vector.broadcast %7 : vector<1x32xf32> to vector<16x32xf32>
    %9 = arith.addf %6, %8 : vector<16x32xf32>
    %c0_9 = arith.constant 0 : index
    %c0_10 = arith.constant 0 : index
    %10 = vector.load %arg5[%c0_9, %c0_10] : memref<1x32xf32, #tpu.memory_space<vmem>>, vector<1x32xf32>
    %c0_11 = arith.constant 0 : index
    %c0_12 = arith.constant 0 : index
    %11 = vector.load %arg6[%c0_11, %c0_12] : memref<1x32xf32, #tpu.memory_space<vmem>>, vector<1x32xf32>
    %cst_13 = arith.constant dense<0.000000e+00> : vector<16xf32>
    %12 = vector.multi_reduction <add>, %9, %cst_13 [1] : vector<16x32xf32> to vector<16xf32>
    %13 = vector.shape_cast %12 : vector<16xf32> to vector<16x1xf32>
    %cst_14 = arith.constant 3.200000e+01 : f32
    %14 = vector.broadcast %cst_14 : f32 to vector<16x1xf32>
    %15 = arith.divf %13, %14 : vector<16x1xf32>
    %16 = vector.broadcast %15 : vector<16x1xf32> to vector<16x32xf32>
    %17 = arith.subf %9, %16 : vector<16x32xf32>
    %18 = arith.mulf %17, %17 : vector<16x32xf32>
    %cst_15 = arith.constant dense<0.000000e+00> : vector<16xf32>
    %19 = vector.multi_reduction <add>, %18, %cst_15 [1] : vector<16x32xf32> to vector<16xf32>
    %20 = vector.shape_cast %19 : vector<16xf32> to vector<16x1xf32>
    %cst_16 = arith.constant 3.200000e+01 : f32
    %21 = vector.broadcast %cst_16 : f32 to vector<16x1xf32>
    %22 = arith.divf %20, %21 : vector<16x1xf32>
    %23 = vector.broadcast %15 : vector<16x1xf32> to vector<16x32xf32>
    %24 = arith.subf %9, %23 : vector<16x32xf32>
    %cst_17 = arith.constant 9.99999974E-6 : f32
    %25 = vector.broadcast %cst_17 : f32 to vector<16x1xf32>
    %26 = arith.addf %22, %25 : vector<16x1xf32>
    %27 = math.rsqrt %26 : vector<16x1xf32>
    %28 = vector.broadcast %27 : vector<16x1xf32> to vector<16x32xf32>
    %29 = arith.mulf %24, %28 : vector<16x32xf32>
    %30 = vector.broadcast %10 : vector<1x32xf32> to vector<16x32xf32>
    %31 = arith.mulf %29, %30 : vector<16x32xf32>
    %32 = vector.broadcast %11 : vector<1x32xf32> to vector<16x32xf32>
    %33 = arith.addf %31, %32 : vector<16x32xf32>
    %c0_18 = arith.constant 0 : index
    %c0_19 = arith.constant 0 : index
    %c0_20 = arith.constant 0 : index
    %34 = vector.load %arg7[%c0_18, %c0_19, %c0_20] : memref<4x16x32xf32, #tpu.memory_space<vmem>>, vector<1x16x32xf32>
    %35 = vector.shape_cast %34 : vector<1x16x32xf32> to vector<16x32xf32>
    %36 = vector.shape_cast %33 : vector<16x32xf32> to vector<1x16x32xf32>
    tpu.vector_store %arg7[%c0_18, %c0_19, %c0_20], %36 {strides = array<i32>} : memref<4x16x32xf32, #tpu.memory_space<vmem>>, vector<1x16x32xf32>,
    %c1 = arith.constant 1 : index
    %c0_21 = arith.constant 0 : index
    %c0_22 = arith.constant 0 : index
    %37 = vector.load %arg1[%c1, %c0_21, %c0_22] : memref<4x9x16xf32, #tpu.memory_space<vmem>>, vector<1x9x16xf32>
    %38 = vector.shape_cast %37 : vector<1x9x16xf32> to vector<9x16xf32>
    %c0_23 = arith.constant 0 : index
    %c0_24 = arith.constant 0 : index
    %39 = vector.load %arg2[%c0_23, %c0_24] : memref<9x32xf32, #tpu.memory_space<vmem>>, vector<9x32xf32>
    %cst_25 = arith.constant dense<0.000000e+00> : vector<16x32xf32>
    %40 = tpu.matmul %38, %39, %cst_25 {dimension_numbers = #tpu.dot_dimension_numbers<[0], [0], [1], [1], [0, 1, 1, 1], [], []>} : vector<9x16xf32>, vector<9x32xf32>, vector<16x32xf32> -> vector<16x32xf32>
    %c1_26 = arith.constant 1 : index
    %c0_27 = arith.constant 0 : index
    %c0_28 = arith.constant 0 : index
    %41 = vector.load %arg4[%c1_26, %c0_27, %c0_28] : memref<4x16x32xf32, #tpu.memory_space<vmem>>, vector<1x16x32xf32>
    %42 = vector.shape_cast %41 : vector<1x16x32xf32> to vector<16x32xf32>
    %43 = arith.addf %42, %40 : vector<16x32xf32>
    %c0_29 = arith.constant 0 : index
    %c0_30 = arith.constant 0 : index
    %44 = vector.load %arg3[%c0_29, %c0_30] : memref<1x32xf32, #tpu.memory_space<vmem>>, vector<1x32xf32>
    %45 = vector.broadcast %44 : vector<1x32xf32> to vector<16x32xf32>
    %46 = arith.addf %43, %45 : vector<16x32xf32>
    %c0_31 = arith.constant 0 : index
    %c0_32 = arith.constant 0 : index
    %47 = vector.load %arg5[%c0_31, %c0_32] : memref<1x32xf32, #tpu.memory_space<vmem>>, vector<1x32xf32>
    %c0_33 = arith.constant 0 : index
    %c0_34 = arith.constant 0 : index
    %48 = vector.load %arg6[%c0_33, %c0_34] : memref<1x32xf32, #tpu.memory_space<vmem>>, vector<1x32xf32>
    %cst_35 = arith.constant dense<0.000000e+00> : vector<16xf32>
    %49 = vector.multi_reduction <add>, %46, %cst_35 [1] : vector<16x32xf32> to vector<16xf32>
    %50 = vector.shape_cast %49 : vector<16xf32> to vector<16x1xf32>
    %cst_36 = arith.constant 3.200000e+01 : f32
    %51 = vector.broadcast %cst_36 : f32 to vector<16x1xf32>
    %52 = arith.divf %50, %51 : vector<16x1xf32>
    %53 = vector.broadcast %52 : vector<16x1xf32> to vector<16x32xf32>
    %54 = arith.subf %46, %53 : vector<16x32xf32>
    %55 = arith.mulf %54, %54 : vector<16x32xf32>
    %cst_37 = arith.constant dense<0.000000e+00> : vector<16xf32>
    %56 = vector.multi_reduction <add>, %55, %cst_37 [1] : vector<16x32xf32> to vector<16xf32>
    %57 = vector.shape_cast %56 : vector<16xf32> to vector<16x1xf32>
    %cst_38 = arith.constant 3.200000e+01 : f32
    %58 = vector.broadcast %cst_38 : f32 to vector<16x1xf32>
    %59 = arith.divf %57, %58 : vector<16x1xf32>
    %60 = vector.broadcast %52 : vector<16x1xf32> to vector<16x32xf32>
    %61 = arith.subf %46, %60 : vector<16x32xf32>
    %cst_39 = arith.constant 9.99999974E-6 : f32
    %62 = vector.broadcast %cst_39 : f32 to vector<16x1xf32>
    %63 = arith.addf %59, %62 : vector<16x1xf32>
    %64 = math.rsqrt %63 : vector<16x1xf32>
    %65 = vector.broadcast %64 : vector<16x1xf32> to vector<16x32xf32>
    %66 = arith.mulf %61, %65 : vector<16x32xf32>
    %67 = vector.broadcast %47 : vector<1x32xf32> to vector<16x32xf32>
    %68 = arith.mulf %66, %67 : vector<16x32xf32>
    %69 = vector.broadcast %48 : vector<1x32xf32> to vector<16x32xf32>
    %70 = arith.addf %68, %69 : vector<16x32xf32>
    %c1_40 = arith.constant 1 : index
    %c0_41 = arith.constant 0 : index
    %c0_42 = arith.constant 0 : index
    %71 = vector.load %arg7[%c1_40, %c0_41, %c0_42] : memref<4x16x32xf32, #tpu.memory_space<vmem>>, vector<1x16x32xf32>
    %72 = vector.shape_cast %71 : vector<1x16x32xf32> to vector<16x32xf32>
    %73 = vector.shape_cast %70 : vector<16x32xf32> to vector<1x16x32xf32>
    tpu.vector_store %arg7[%c1_40, %c0_41, %c0_42], %73 {strides = array<i32>} : memref<4x16x32xf32, #tpu.memory_space<vmem>>, vector<1x16x32xf32>,
    %c2 = arith.constant 2 : index
    %c0_43 = arith.constant 0 : index
    %c0_44 = arith.constant 0 : index
    %74 = vector.load %arg1[%c2, %c0_43, %c0_44] : memref<4x9x16xf32, #tpu.memory_space<vmem>>, vector<1x9x16xf32>
    %75 = vector.shape_cast %74 : vector<1x9x16xf32> to vector<9x16xf32>
    %c0_45 = arith.constant 0 : index
    %c0_46 = arith.constant 0 : index
    %76 = vector.load %arg2[%c0_45, %c0_46] : memref<9x32xf32, #tpu.memory_space<vmem>>, vector<9x32xf32>
    %cst_47 = arith.constant dense<0.000000e+00> : vector<16x32xf32>
    %77 = tpu.matmul %75, %76, %cst_47 {dimension_numbers = #tpu.dot_dimension_numbers<[0], [0], [1], [1], [0, 1, 1, 1], [], []>} : vector<9x16xf32>, vector<9x32xf32>, vector<16x32xf32> -> vector<16x32xf32>
    %c2_48 = arith.constant 2 : index
    %c0_49 = arith.constant 0 : index
    %c0_50 = arith.constant 0 : index
    %78 = vector.load %arg4[%c2_48, %c0_49, %c0_50] : memref<4x16x32xf32, #tpu.memory_space<vmem>>, vector<1x16x32xf32>
    %79 = vector.shape_cast %78 : vector<1x16x32xf32> to vector<16x32xf32>
    %80 = arith.addf %79, %77 : vector<16x32xf32>
    %c0_51 = arith.constant 0 : index
    %c0_52 = arith.constant 0 : index
    %81 = vector.load %arg3[%c0_51, %c0_52] : memref<1x32xf32, #tpu.memory_space<vmem>>, vector<1x32xf32>
    %82 = vector.broadcast %81 : vector<1x32xf32> to vector<16x32xf32>
    %83 = arith.addf %80, %82 : vector<16x32xf32>
    %c0_53 = arith.constant 0 : index
    %c0_54 = arith.constant 0 : index
    %84 = vector.load %arg5[%c0_53, %c0_54] : memref<1x32xf32, #tpu.memory_space<vmem>>, vector<1x32xf32>
    %c0_55 = arith.constant 0 : index
    %c0_56 = arith.constant 0 : index
    %85 = vector.load %arg6[%c0_55, %c0_56] : memref<1x32xf32, #tpu.memory_space<vmem>>, vector<1x32xf32>
    %cst_57 = arith.constant dense<0.000000e+00> : vector<16xf32>
    %86 = vector.multi_reduction <add>, %83, %cst_57 [1] : vector<16x32xf32> to vector<16xf32>
    %87 = vector.shape_cast %86 : vector<16xf32> to vector<16x1xf32>
    %cst_58 = arith.constant 3.200000e+01 : f32
    %88 = vector.broadcast %cst_58 : f32 to vector<16x1xf32>
    %89 = arith.divf %87, %88 : vector<16x1xf32>
    %90 = vector.broadcast %89 : vector<16x1xf32> to vector<16x32xf32>
    %91 = arith.subf %83, %90 : vector<16x32xf32>
    %92 = arith.mulf %91, %91 : vector<16x32xf32>
    %cst_59 = arith.constant dense<0.000000e+00> : vector<16xf32>
    %93 = vector.multi_reduction <add>, %92, %cst_59 [1] : vector<16x32xf32> to vector<16xf32>
    %94 = vector.shape_cast %93 : vector<16xf32> to vector<16x1xf32>
    %cst_60 = arith.constant 3.200000e+01 : f32
    %95 = vector.broadcast %cst_60 : f32 to vector<16x1xf32>
    %96 = arith.divf %94, %95 : vector<16x1xf32>
    %97 = vector.broadcast %89 : vector<16x1xf32> to vector<16x32xf32>
    %98 = arith.subf %83, %97 : vector<16x32xf32>
    %cst_61 = arith.constant 9.99999974E-6 : f32
    %99 = vector.broadcast %cst_61 : f32 to vector<16x1xf32>
    %100 = arith.addf %96, %99 : vector<16x1xf32>
    %101 = math.rsqrt %100 : vector<16x1xf32>
    %102 = vector.broadcast %101 : vector<16x1xf32> to vector<16x32xf32>
    %103 = arith.mulf %98, %102 : vector<16x32xf32>
    %104 = vector.broadcast %84 : vector<1x32xf32> to vector<16x32xf32>
    %105 = arith.mulf %103, %104 : vector<16x32xf32>
    %106 = vector.broadcast %85 : vector<1x32xf32> to vector<16x32xf32>
    %107 = arith.addf %105, %106 : vector<16x32xf32>
    %c2_62 = arith.constant 2 : index
    %c0_63 = arith.constant 0 : index
    %c0_64 = arith.constant 0 : index
    %108 = vector.load %arg7[%c2_62, %c0_63, %c0_64] : memref<4x16x32xf32, #tpu.memory_space<vmem>>, vector<1x16x32xf32>
    %109 = vector.shape_cast %108 : vector<1x16x32xf32> to vector<16x32xf32>
    %110 = vector.shape_cast %107 : vector<16x32xf32> to vector<1x16x32xf32>
    tpu.vector_store %arg7[%c2_62, %c0_63, %c0_64], %110 {strides = array<i32>} : memref<4x16x32xf32, #tpu.memory_space<vmem>>, vector<1x16x32xf32>,
    %c3 = arith.constant 3 : index
    %c0_65 = arith.constant 0 : index
    %c0_66 = arith.constant 0 : index
    %111 = vector.load %arg1[%c3, %c0_65, %c0_66] : memref<4x9x16xf32, #tpu.memory_space<vmem>>, vector<1x9x16xf32>
    %112 = vector.shape_cast %111 : vector<1x9x16xf32> to vector<9x16xf32>
    %c0_67 = arith.constant 0 : index
    %c0_68 = arith.constant 0 : index
    %113 = vector.load %arg2[%c0_67, %c0_68] : memref<9x32xf32, #tpu.memory_space<vmem>>, vector<9x32xf32>
    %cst_69 = arith.constant dense<0.000000e+00> : vector<16x32xf32>
    %114 = tpu.matmul %112, %113, %cst_69 {dimension_numbers = #tpu.dot_dimension_numbers<[0], [0], [1], [1], [0, 1, 1, 1], [], []>} : vector<9x16xf32>, vector<9x32xf32>, vector<16x32xf32> -> vector<16x32xf32>
    %c3_70 = arith.constant 3 : index
    %c0_71 = arith.constant 0 : index
    %c0_72 = arith.constant 0 : index
    %115 = vector.load %arg4[%c3_70, %c0_71, %c0_72] : memref<4x16x32xf32, #tpu.memory_space<vmem>>, vector<1x16x32xf32>
    %116 = vector.shape_cast %115 : vector<1x16x32xf32> to vector<16x32xf32>
    %117 = arith.addf %116, %114 : vector<16x32xf32>
    %c0_73 = arith.constant 0 : index
    %c0_74 = arith.constant 0 : index
    %118 = vector.load %arg3[%c0_73, %c0_74] : memref<1x32xf32, #tpu.memory_space<vmem>>, vector<1x32xf32>
    %119 = vector.broadcast %118 : vector<1x32xf32> to vector<16x32xf32>
    %120 = arith.addf %117, %119 : vector<16x32xf32>
    %c0_75 = arith.constant 0 : index
    %c0_76 = arith.constant 0 : index
    %121 = vector.load %arg5[%c0_75, %c0_76] : memref<1x32xf32, #tpu.memory_space<vmem>>, vector<1x32xf32>
    %c0_77 = arith.constant 0 : index
    %c0_78 = arith.constant 0 : index
    %122 = vector.load %arg6[%c0_77, %c0_78] : memref<1x32xf32, #tpu.memory_space<vmem>>, vector<1x32xf32>
    %cst_79 = arith.constant dense<0.000000e+00> : vector<16xf32>
    %123 = vector.multi_reduction <add>, %120, %cst_79 [1] : vector<16x32xf32> to vector<16xf32>
    %124 = vector.shape_cast %123 : vector<16xf32> to vector<16x1xf32>
    %cst_80 = arith.constant 3.200000e+01 : f32
    %125 = vector.broadcast %cst_80 : f32 to vector<16x1xf32>
    %126 = arith.divf %124, %125 : vector<16x1xf32>
    %127 = vector.broadcast %126 : vector<16x1xf32> to vector<16x32xf32>
    %128 = arith.subf %120, %127 : vector<16x32xf32>
    %129 = arith.mulf %128, %128 : vector<16x32xf32>
    %cst_81 = arith.constant dense<0.000000e+00> : vector<16xf32>
    %130 = vector.multi_reduction <add>, %129, %cst_81 [1] : vector<16x32xf32> to vector<16xf32>
    %131 = vector.shape_cast %130 : vector<16xf32> to vector<16x1xf32>
    %cst_82 = arith.constant 3.200000e+01 : f32
    %132 = vector.broadcast %cst_82 : f32 to vector<16x1xf32>
    %133 = arith.divf %131, %132 : vector<16x1xf32>
    %134 = vector.broadcast %126 : vector<16x1xf32> to vector<16x32xf32>
    %135 = arith.subf %120, %134 : vector<16x32xf32>
    %cst_83 = arith.constant 9.99999974E-6 : f32
    %136 = vector.broadcast %cst_83 : f32 to vector<16x1xf32>
    %137 = arith.addf %133, %136 : vector<16x1xf32>
    %138 = math.rsqrt %137 : vector<16x1xf32>
    %139 = vector.broadcast %138 : vector<16x1xf32> to vector<16x32xf32>
    %140 = arith.mulf %135, %139 : vector<16x32xf32>
    %141 = vector.broadcast %121 : vector<1x32xf32> to vector<16x32xf32>
    %142 = arith.mulf %140, %141 : vector<16x32xf32>
    %143 = vector.broadcast %122 : vector<1x32xf32> to vector<16x32xf32>
    %144 = arith.addf %142, %143 : vector<16x32xf32>
    %c3_84 = arith.constant 3 : index
    %c0_85 = arith.constant 0 : index
    %c0_86 = arith.constant 0 : index
    %145 = vector.load %arg7[%c3_84, %c0_85, %c0_86] : memref<4x16x32xf32, #tpu.memory_space<vmem>>, vector<1x16x32xf32>
    %146 = vector.shape_cast %145 : vector<1x16x32xf32> to vector<16x32xf32>
    %147 = vector.shape_cast %144 : vector<16x32xf32> to vector<1x16x32xf32>
    tpu.vector_store %arg7[%c3_84, %c0_85, %c0_86], %147 {strides = array<i32>} : memref<4x16x32xf32, #tpu.memory_space<vmem>>, vector<1x16x32xf32>,
    return
  }
  func.func @transform_0(%arg0: i32) -> (i32, i32, i32) {
    %c0_i32 = arith.constant 0 : i32
    %c0_i32_0 = arith.constant 0 : i32
    %c0_i32_1 = arith.constant 0 : i32
    return %arg0, %c0_i32, %c0_i32_0 : i32, i32, i32
  }
  func.func @transform_1(%arg0: i32) -> (i32, i32) {
    %c0_i32 = arith.constant 0 : i32
    %c0_i32_0 = arith.constant 0 : i32
    %c0_i32_1 = arith.constant 0 : i32
    return %c0_i32, %c0_i32_0 : i32, i32
  }
  func.func @transform_2(%arg0: i32) -> (i32, i32) {
    %c0_i32 = arith.constant 0 : i32
    %c0_i32_0 = arith.constant 0 : i32
    %c0_i32_1 = arith.constant 0 : i32
    return %c0_i32, %c0_i32_0 : i32, i32
  }
  func.func @transform_3(%arg0: i32) -> (i32, i32, i32) {
    %c0_i32 = arith.constant 0 : i32
    %c0_i32_0 = arith.constant 0 : i32
    %c0_i32_1 = arith.constant 0 : i32
    return %arg0, %c0_i32, %c0_i32_0 : i32, i32, i32
  }
  func.func @transform_4(%arg0: i32) -> (i32, i32) {
    %c0_i32 = arith.constant 0 : i32
    %c0_i32_0 = arith.constant 0 : i32
    %c0_i32_1 = arith.constant 0 : i32
    return %c0_i32, %c0_i32_0 : i32, i32
  }
  func.func @transform_5(%arg0: i32) -> (i32, i32) {
    %c0_i32 = arith.constant 0 : i32
    %c0_i32_0 = arith.constant 0 : i32
    %c0_i32_1 = arith.constant 0 : i32
    return %c0_i32, %c0_i32_0 : i32, i32
  }
  func.func @transform_6(%arg0: i32) -> (i32, i32, i32) {
    %c0_i32 = arith.constant 0 : i32
    %c0_i32_0 = arith.constant 0 : i32
    %c0_i32_1 = arith.constant 0 : i32
    return %arg0, %c0_i32, %c0_i32_0 : i32, i32, i32
  }
}

</mosaic_0001>

<bundles_post_ra>
// kernel: tpu_custom_call.1
= control target key start
LH: loop header
LB: loop body
LE: loop exit
PB: predicated region body
PF: predicated region fallthrough
CT: control target
= control target key end

     0   :  { %vm67_vm0 = vcmask 1040384   ;;  %s1084_s0 = inlined_call_operand.vmem [shape: f32[4,9,16], index: 0, kind: input, shape index: {}]   ;;  %s1085_s1 = inlined_call_operand.vmem [shape: f32[9,32], index: 1, kind: input, shape index: {}]   ;;  %s1086_s2 = inlined_call_operand.vmem [shape: f32[1,32], index: 2, kind: input, shape index: {}]   ;;  %s1087_s3 = inlined_call_operand.vmem [shape: f32[4,16,32], index: 3, kind: input, shape index: {}]   ;;  %s1088_s4 = inlined_call_operand.vmem [shape: f32[1,32], index: 4, kind: input, shape index: {}]   ;;  %s1089_s5 = inlined_call_operand.vmem [shape: f32[1,32], index: 5, kind: input, shape index: {}]   ;;  %s1090_s6 = inlined_call_operand.hbm [shape: f32[4,16,32], index: 6, kind: output, shape index: {}]  }
   0x1   :  { %v24_v0 = vld [vmem:[%s1084_s0] sm:$0xff]  ;;  %v775_v1 = vld [vmem:[%s1084_s0 + $0x10] sm:$0xff]  ;;  %v25_v2 = vld [vmem:[%s1084_s0 + $0x8] sm:$0x1] }
   0x2   :  { %28 = vxpose.xlu0.b32.start [1/2] (short) (narrow) %v24_v0, 16  ;;  %212 = vxpose.xlu1.b32.start [1/2] (short) (narrow) %v775_v1, 16  ;;  %v776_v3 = vld [vmem:[%s1084_s0 + $0x18] sm:$0x1]  ;;  %v27_v4 = vld [vmem:[%s1085_s1 + $0x8] sm:$0x1] }
   0x3   :  { %821 = vmatprep.subr.msk.mxu0 %vm67_vm0, %v27_v4  ;;  %v26_v5 = vld [vmem:[%s1085_s1] sm:$0xff]  ;;  %v211_v6 = vld [vmem:[%s1085_s1 + $0x8] sm:$0x1] }
   0x4   :  { %11 = vsyncpa [#allocation3], 0  ;;  %822 = vmatpush3.msk.msra.mxu0 %vm67_vm0, %v27_v4  ;;  %828 = vmatprep.subr.msk.mxu1 %vm67_vm0, %v211_v6  ;;  %v393_v7 = vld [vmem:[%s1085_s1 + $0x8] sm:$0x1]  ;;  %v785_v8 = vld [vmem:[%s1084_s0 + $0x20] sm:$0xff]  ;;  %vm60_vm1 = vcmask 72704  }
   0x5   :  { %v795_v9 = vld [vmem:[%s1084_s0 + $0x30] sm:$0xff]  ;;  %823 = vmatprep.subr.mxu0 %v26_v5  ;;  %829 = vmatpush3.msk.msra.mxu1 %vm67_vm0, %v211_v6  ;;  %v575_v10 = vld [vmem:[%s1085_s1 + $0x8] sm:$0x1]  ;;  %v796_v12 = vld [vmem:[%s1084_s0 + $0x38] sm:$0x1]  ;;  %vm161_vm2 = vcmask 261120  }
   0x6   :  { %29 = vxpose.xlu0.b32.end [2/2] (short) (narrow) %v25_v2, 16  ;;  %213 = vxpose.xlu1.b32.end [2/2] (short) (narrow) %v776_v3, 16  ;;  %v786_v11 = vld [vmem:[%s1084_s0 + $0x28] sm:$0x1]  ;;  %v781_v22 = vld [vmem:[%s1087_s3 + $0x18] sm:$0xff]  ;;  %v146_v24 = vld [vmem:[%s1087_s3] sm:$0xff] }
   0x7   :  { %824 = vmatpush3.msra.mxu0 %v26_v5  ;;  %830 = vmatprep.subr.mxu1 %v26_v5  ;;  %v147_v21 = vld [vmem:[%s1087_s3 + $0x8] sm:$0xff]  ;;  %v772_v26 = vld [vmem:[%s1086_s2] ss:$0 sm:$0xff]  ;;  %v780_v29 = vld [vmem:[%s1087_s3 + $0x10] sm:$0xff] }
   0x8   :  { %831 = vmatpush3.msra.mxu1 %v26_v5  ;;  %835 = vmatprep.subr.msk.mxu0 %vm67_vm0, %v393_v7  ;;  %v791_v38 = vld [vmem:[%s1087_s3 + $0x28] sm:$0xff]  ;;  %v790_v42 = vld [vmem:[%s1087_s3 + $0x20] sm:$0xff]  ;;  %v800_v44 = vld [vmem:[%s1087_s3 + $0x30] sm:$0xff] }
   0x9   :  { %842 = vmatprep.subr.msk.mxu1 %vm67_vm0, %v575_v10  ;;  %v801_v48 = vld [vmem:[%s1087_s3 + $0x38] sm:$0xff] }
   0xa   :  { %394 = vxpose.xlu0.b32.start [1/2] (short) (narrow) %v785_v8, 16  ;;  %576 = vxpose.xlu1.b32.start [1/2] (short) (narrow) %v795_v9, 16 }
   0xe   :  { %395 = vxpose.xlu0.b32.end [2/2] (short) (narrow) %v786_v11, 16  ;;  %577 = vxpose.xlu1.b32.end [2/2] (short) (narrow) %v796_v12, 16 }
  0x7e   :  { %v44_v13 = vpop.trf.xlu0  ;;  %v228_v14 = vpop.trf.xlu1 }
  0x7f   :  { %825 = vmatprep.mubr.msk.f32.mxu0 %vm60_vm1, %v44_v13  ;;  %832 = vmatprep.mubr.msk.f32.mxu1 %vm60_vm1, %v228_v14 }
  0x82   :  { %v45_v15 = vpop.trf.xlu0  ;;  %v229_v16 = vpop.trf.xlu1 }
  0x83   :  { %826 = vmatmul.mubr.msk.f32.vlgmr.msra.gmra.mxu0 %vm60_vm1, %v45_v15  ;;  %833 = vmatmul.mubr.msk.f32.vlgmr.msra.gmra.mxu1 %vm60_vm1, %v229_v16 }
  0x84   :  { %836 = vmatpush3.msk.msra.mxu0 %vm67_vm0, %v393_v7  ;;  %843 = vmatpush3.msk.msra.mxu1 %vm67_vm0, %v575_v10 }
  0x85   :  { %837 = vmatprep.subr.mxu0 %v26_v5  ;;  %844 = vmatprep.subr.mxu1 %v26_v5 }
  0x86   :  { %v410_v17 = vpop.trf.xlu0  ;;  %v592_v18 = vpop.trf.xlu1  ;;  %838 = vmatpush3.msra.mxu0 %v26_v5  ;;  %845 = vmatpush3.msra.mxu1 %v26_v5 }
  0x87   :  { %839 = vmatprep.mubr.msk.f32.mxu0 %vm60_vm1, %v410_v17  ;;  %846 = vmatprep.mubr.msk.f32.mxu1 %vm60_vm1, %v592_v18 }
  0x8a   :  { %v411_v19 = vpop.trf.xlu0  ;;  %v593_v20 = vpop.trf.xlu1 }
  0x8b   :  { %840 = vmatmul.mubr.msk.f32.vlgmr.msra.gmra.mxu0 %vm60_vm1, %v411_v19  ;;  %847 = vmatmul.mubr.msk.f32.vlgmr.msra.gmra.mxu1 %vm60_vm1, %v593_v20 }
 0x143   :  { %v827_v23 = vpop.f32.mrf.mxu0  ;;  %v834_v25 = vpop.f32.mrf.mxu1 }
 0x144   :  { %v149_v27 = vadd.f32 %v827_v23, %v147_v21  ;;  %v332_v28 = vadd.f32 %v834_v25, %v781_v22 }
 0x145   :  { %v137_v30 = vpop.f32.mrf.mxu0  ;;  %v319_v31 = vpop.f32.mrf.mxu1 }
 0x146   :  { %v148_v32 = vadd.f32 %v146_v24, %v137_v30  ;;  %v158_v33 = vadd.f32 %v772_v26, %v149_v27  ;;  %v341_v34 = vadd.f32 %v772_v26, %v332_v28  ;;  %v331_v35 = vadd.f32 %v780_v29, %v319_v31 }
 0x148   :  { %v165_v36 = vsel %vm161_vm2, %v158_v33, 0.0  ;;  %v157_v37 = vadd.f32 %v772_v26, %v148_v32  ;;  %v347_v40 = vsel %vm161_vm2, %v341_v34, 0.0  ;;  %v340_v45 = vadd.f32 %v772_v26, %v331_v35 }
 0x149   :  { %166 = vadd.xlane.f32.xlu1 %v165_v36 }
 0x14a   :  { %v162_v39 = vsel %vm161_vm2, %v157_v37, 0.0  ;;  %v344_v52 = vsel %vm161_vm2, %v340_v45, 0.0 }
 0x14b   :  { %163 = vadd.xlane.f32.xlu0 %v162_v39  ;;  %v841_v41 = vpop.f32.mrf.mxu0  ;;  %v848_v43 = vpop.f32.mrf.mxu1 }
 0x14c   :  { %v514_v46 = vadd.f32 %v841_v41, %v791_v38  ;;  %v696_v53 = vadd.f32 %v848_v43, %v801_v48 }
 0x14d   :  { %348 = vadd.xlane.f32.xlu1 %v347_v40  ;;  %v501_v47 = vpop.f32.mrf.mxu0  ;;  %v683_v49 = vpop.f32.mrf.mxu1 }
 0x14e   :  { %v513_v50 = vadd.f32 %v790_v42, %v501_v47  ;;  %v695_v51 = vadd.f32 %v800_v44, %v683_v49  ;;  %v523_v55 = vadd.f32 %v772_v26, %v514_v46  ;;  %v705_v60 = vadd.f32 %v772_v26, %v696_v53 }
 0x150   :  { %v522_v54 = vadd.f32 %v772_v26, %v513_v50  ;;  %v704_v56 = vadd.f32 %v772_v26, %v695_v51  ;;  %v529_v58 = vsel %vm161_vm2, %v523_v55, 0.0  ;;  %v711_v61 = vsel %vm161_vm2, %v705_v60, 0.0 }
 0x151   :  { %345 = vadd.xlane.f32.xlu1 %v344_v52 }
 0x152   :  { %v526_v57 = vsel %vm161_vm2, %v522_v54, 0.0  ;;  %v708_v59 = vsel %vm161_vm2, %v704_v56, 0.0 }
 0x153   :  { %527 = vadd.xlane.f32.xlu0 %v526_v57 }
 0x155   :  { %530 = vadd.xlane.f32.xlu1 %v529_v58 }
 0x157   :  { %709 = vadd.xlane.f32.xlu0 %v708_v59 }
 0x159   :  { %712 = vadd.xlane.f32.xlu1 %v711_v61  ;;  %v773_v61 = vld [vmem:[%s1088_s4] ss:$0 sm:$0xff]  ;;  %s891_s4 = smov [#allocation2]  }
 0x1d2   :  { %v167_v62 = vpop.xlane.xlu1 %166 }
 0x1d3   :  { %v170_v63 = vmul.f32 0.03125, %v167_v62 }
 0x1d4   :  { %v164_v0 = vpop.xlane.xlu0 %163 }
 0x1d5   :  { %v1019_v1 = vsub.f32 %v158_v33, %v170_v63  ;;  %v169_v2 = vmul.f32 0.03125, %v164_v0 }
 0x1d6   :  { %v349_v3 = vpop.xlane.xlu1 %348 }
 0x1d7   :  { %v1021_v4 = vsub.f32 %v157_v37, %v169_v2  ;;  %v351_v5 = vmul.f32 0.03125, %v349_v3  ;;  %v174_v6 = vmul.f32 %v1019_v1, %v1019_v1  ;;  %v774_v3 = vld [vmem:[%s1089_s5] ss:$0 sm:$0xff]  ;;  %s758_s5 = sshll.u32 %s891_s4, 4  ;;  %s759_s5 = int_to_ptr.vmem [resolvable:$true] %s758_s5 }
 0x1d8   :  { %s869_s17 = scalar_lea.vmem %s759_s5, 1024  ;;  %p874_p1 = scmp.lt.s32.totalorder %s759_s5, %s759_s5 }
 0x1d9   :  { %v1025_v7 = vsub.f32 %v341_v34, %v351_v5  ;;  %v178_v8 = vsel %vm161_vm2, %v174_v6, 0.0  ;;  %v173_v9 = vmul.f32 %v1021_v4, %v1021_v4  ;;  %p870_p0 = scmp.ne.s32.totalorder %s759_s5, %s869_s17  ;;  %p875_p2 = scmp.lt.s32.totalorder %s869_s17, %s869_s17 }
 0x1da   :  { %v346_v10 = vpop.xlane.xlu1 %345  ;;  %179 = vadd.xlane.f32.xlu1 %v178_v8 }
 0x1db   :  { %v350_v11 = vmul.f32 0.03125, %v346_v10  ;;  %v175_v12 = vsel %vm161_vm2, %v173_v9, 0.0  ;;  %v355_v13 = vmul.f32 %v1025_v7, %v1025_v7  ;;  %p876_p3 = por %p875_p2, %p874_p1 }
 0x1dc   :  { %176 = vadd.xlane.f32.xlu0 %v175_v12  ;;  %v528_v14 = vpop.xlane.xlu0 %527 }
 0x1dd   :  { %v1033_v15 = vsub.f32 %v340_v45, %v350_v11  ;;  %v532_v16 = vmul.f32 0.03125, %v528_v14  ;;  %v359_v17 = vsel %vm161_vm2, %v355_v13, 0.0  ;;  %p877_p4 = pnand %p876_p3, %p870_p0 }
 0x1de   :  { %360 = vadd.xlane.f32.xlu1 %v359_v17  ;;  %v531_v18 = vpop.xlane.xlu1 %530 }
 0x1df   :  { %v1036_v19 = vsub.f32 %v522_v54, %v532_v16  ;;  %v533_v20 = vmul.f32 0.03125, %v531_v18  ;;  %v354_v21 = vmul.f32 %v1033_v15, %v1033_v15 }
 0x1e0   :  { %v710_v22 = vpop.xlane.xlu0 %709 }
 0x1e1   :  { %v1040_v23 = vsub.f32 %v523_v55, %v533_v20  ;;  %v714_v24 = vmul.f32 0.03125, %v710_v22  ;;  %v356_v25 = vsel %vm161_vm2, %v354_v21, 0.0  ;;  %v536_v26 = vmul.f32 %v1036_v19, %v1036_v19 }
 0x1e2   :  { %v713_v27 = vpop.xlane.xlu1 %712  ;;  %357 = vadd.xlane.f32.xlu0 %v356_v25 }
 0x1e3   :  { %v1045_v28 = vsub.f32 %v704_v56, %v714_v24  ;;  %v715_v29 = vmul.f32 0.03125, %v713_v27  ;;  %v537_v30 = vmul.f32 %v1040_v23, %v1040_v23  ;;  %v538_v33 = vsel %vm161_vm2, %v536_v26, 0.0 }
 0x1e5   :  { %v1049_v31 = vsub.f32 %v705_v60, %v715_v29  ;;  %v541_v32 = vsel %vm161_vm2, %v537_v30, 0.0  ;;  %v718_v34 = vmul.f32 %v1045_v28, %v1045_v28 }
 0x1e6   :  { %542 = vadd.xlane.f32.xlu1 %v541_v32  ;;  %539 = vadd.xlane.f32.xlu0 %v538_v33 }
 0x1e7   :  { %v719_v35 = vmul.f32 %v1049_v31, %v1049_v31  ;;  %v720_v37 = vsel %vm161_vm2, %v718_v34, 0.0 }
 0x1e9   :  { %v723_v36 = vsel %vm161_vm2, %v719_v35, 0.0 }
 0x1ea   :  { %724 = vadd.xlane.f32.xlu1 %v723_v36  ;;  %721 = vadd.xlane.f32.xlu0 %v720_v37 }
 0x263   :  { %v180_v38 = vpop.xlane.xlu1 %179 }
 0x264   :  { %v182_v39 = vmul.f32 0.03125, %v180_v38 }
 0x265   :  { %v177_v40 = vpop.xlane.xlu0 %176 }
 0x266   :  { %v184_v41 = vadd.f32 1e-05, %v182_v39  ;;  %v181_v42 = vmul.f32 0.03125, %v177_v40 }
 0x267   :  { %v361_v43 = vpop.xlane.xlu1 %360 }
 0x268   :  { %853 = vrsqrt.f32 %v184_v41  ;;  %v183_v44 = vadd.f32 1e-05, %v181_v42  ;;  %v363_v45 = vmul.f32 0.03125, %v361_v43 }
 0x26a   :  { %855 = vrsqrt.f32 %v183_v44  ;;  %v365_v46 = vadd.f32 1e-05, %v363_v45 }
 0x26b   :  { %v358_v47 = vpop.xlane.xlu0 %357 }
 0x26c   :  { %857 = vrsqrt.f32 %v365_v46  ;;  %v362_v48 = vmul.f32 0.03125, %v358_v47 }
 0x26e   :  { %v364_v49 = vadd.f32 1e-05, %v362_v48 }
 0x26f   :  { %v543_v50 = vpop.xlane.xlu1 %542  ;;  %v540_v51 = vpop.xlane.xlu0 %539 }
 0x270   :  { %859 = vrsqrt.f32 %v364_v49  ;;  %v545_v52 = vmul.f32 0.03125, %v543_v50  ;;  %v544_v53 = vmul.f32 0.03125, %v540_v51 }
 0x272   :  { %v547_v54 = vadd.f32 1e-05, %v545_v52  ;;  %v546_v55 = vadd.f32 1e-05, %v544_v53 }
 0x273   :  { %v725_v56 = vpop.xlane.xlu1 %724  ;;  %v722_v57 = vpop.xlane.xlu0 %721 }
 0x274   :  { %861 = vrsqrt.f32 %v547_v54  ;;  %v727_v58 = vmul.f32 0.03125, %v725_v56  ;;  %v726_v59 = vmul.f32 0.03125, %v722_v57 }
 0x275   :  { %v854_v60 = vpop.eup %853  ;;  %863 = vrsqrt.f32 %v546_v55 }
 0x276   :  { %v188_v62 = vmul.f32 %v854_v60, %v1019_v1  ;;  %v729_v63 = vadd.f32 1e-05, %v727_v58  ;;  %v728_v0 = vadd.f32 1e-05, %v726_v59 }
 0x277   :  { %v856_v2 = vpop.eup %855 }
 0x278   :  { %v196_v5 = vmul.f32 %v773_v61, %v188_v62  ;;  %v187_v6 = vmul.f32 %v856_v2, %v1021_v4  ;;  %865 = vrsqrt.f32 %v729_v63 }
 0x279   :  { %v858_v8 = vpop.eup %857  ;;  %867 = vrsqrt.f32 %v728_v0 }
 0x27a   :  { %v204_v9 = vadd.f32 %v774_v3, %v196_v5  ;;  %v195_v10 = vmul.f32 %v773_v61, %v187_v6  ;;  %v369_v11 = vmul.f32 %v858_v8, %v1025_v7 }
 0x27c   :  { %206 = vst.msk [vmem:[#allocation2 + $0x8] sm:$0xff] %vm161_vm2, %v204_v9  ;;  %v203_v1 = vadd.f32 %v774_v3, %v195_v10  ;;  %v377_v12 = vmul.f32 %v773_v61, %v369_v11 }
 0x27d   :  { %v860_v13 = vpop.eup %859 }
 0x27e   :  { %205 = vst.msk [vmem:[#allocation2] sm:$0xff] %vm161_vm2, %v203_v1  ;;  %v385_v14 = vadd.f32 %v774_v3, %v377_v12  ;;  %v368_v16 = vmul.f32 %v860_v13, %v1033_v15 }
 0x280   :  { %388 = vst.msk [vmem:[#allocation2 + $0x18] sm:$0xff] %vm161_vm2, %v385_v14  ;;  %v376_v4 = vmul.f32 %v773_v61, %v368_v16 }
 0x281   :  { %v862_v17 = vpop.eup %861 }
 0x282   :  { %v864_v18 = vpop.eup %863  ;;  %v384_v20 = vadd.f32 %v774_v3, %v376_v4  ;;  %v551_v21 = vmul.f32 %v862_v17, %v1040_v23 }
 0x283   :  { %v550_v7 = vmul.f32 %v864_v18, %v1036_v19 }
 0x284   :  { %387 = vst.msk [vmem:[#allocation2 + $0x10] sm:$0xff] %vm161_vm2, %v384_v20  ;;  %v559_v22 = vmul.f32 %v773_v61, %v551_v21 }
 0x285   :  { %v866_v24 = vpop.eup %865  ;;  %v558_v25 = vmul.f32 %v773_v61, %v550_v7 }
 0x286   :  { %v868_v26 = vpop.eup %867  ;;  %v567_v27 = vadd.f32 %v774_v3, %v559_v22  ;;  %v733_v29 = vmul.f32 %v866_v24, %v1049_v31 }
 0x287   :  { %v566_v15 = vadd.f32 %v774_v3, %v558_v25  ;;  %v732_v30 = vmul.f32 %v868_v26, %v1045_v28 }
 0x288   :  { %570 = vst.msk [vmem:[#allocation2 + $0x28] sm:$0xff] %vm161_vm2, %v567_v27  ;;  %v741_v32 = vmul.f32 %v773_v61, %v733_v29 }
 0x289   :  { %569 = vst.msk [vmem:[#allocation2 + $0x20] sm:$0xff] %vm161_vm2, %v566_v15  ;;  %v740_v19 = vmul.f32 %v773_v61, %v732_v30 }
 0x28a   :  { %v749_v23 = vadd.f32 %v774_v3, %v741_v32 }
 0x28b   :  { %v748_v33 = vadd.f32 %v774_v3, %v740_v19 }
 0x28c   :  { %752 = vst.msk [vmem:[#allocation2 + $0x38] sm:$0xff] %vm161_vm2, %v749_v23 }
 0x28d   :  { %751 = vst.msk [vmem:[#allocation2 + $0x30] sm:$0xff] %vm161_vm2, %v748_v33 }
 0x28e   :  { %880 = shalt.err (!%p877_p4)
}
 0x28f   :  { %s892_s18 = smov 128   ;;  %s893_s19 = smov 8  }
 0x290   :  { %764 = dma.vmem_to_hbm [thread:$0]  %s759_s5, 1024, %s1090_s6, [#allocation3], %s892_s18, %s892_s18, %s893_s19  }
 0x291   :  { %889 = dma.done.wait [#allocation3], 1024  }
 0x292   :  { %890 = vsyncadd [#allocation3], 4294966272 }
 0x293   :  { %768 = vsyncpa [#allocation3], 1 }

</bundles_post_ra>
